<compile_context>
chip_gen: v6e
topology: v6e:2x2x1
jax: 0.10.0
libtpu: 0.0.40
codegen_flags: <defaults>
</compile_context>

<pallas_src>
import jax
import jax.numpy as jnp
from jax.experimental import pallas as pl
from jax.experimental.pallas import tpu as pltpu


def _round_up(n, m):
    return (n + m - 1) // m * m


def _disc_kernel(x_ref, w1_ref, b1_ref, w2_ref, b2_ref, w3_ref, b3_ref, o_ref):
    # ---- fc1 + ReLU : [TM, Z](bf16) @ [Z, 512](bf16) -> f32 acc.
    # Epilogue runs in b1's dtype (bf16 on v6e/v7x, f32 on v5e); h1 is then bf16
    # for the fc2 MXU feed, halving vreg/VMEM pressure of the TM x 512 tensor.
    x = x_ref[...].astype(jnp.bfloat16)
    h1 = jnp.dot(x, w1_ref[...], preferred_element_type=jnp.float32)
    h1 = jnp.maximum(h1.astype(b1_ref.dtype) + b1_ref[...], 0.0).astype(jnp.bfloat16)

    # ---- fc2 + ReLU : [TM, 512](bf16) @ [512, 128](bf16) -> f32 acc, f32 epilogue.
    h2 = jnp.dot(h1, w2_ref[...], preferred_element_type=jnp.float32)
    h2 = jnp.maximum(h2 + b2_ref[...], 0.0)

    # ---- fc3 + sigmoid : N=1 "matmul" kept off the MXU.  VPU multiply against
    # the [1,128] weight row, one XLU transpose (unit has slack) so the reduction
    # runs over sublanes and lands directly as a lane-major [1, TM] row -> the
    # store is dense/unmasked instead of TM/8 masked single-lane stores.
    prod_t = (h2 * w3_ref[...]).T                                   # [128, TM]
    logits = jnp.sum(prod_t, axis=0, keepdims=True) + b3_ref[...]   # [1, TM]
    o_ref[...] = jax.nn.sigmoid(logits).astype(o_ref.dtype)


def _pick_tile(batch):
    """Batch tile size.

    * B <= 256: one full-array tile (block == array, so any size is layout-legal;
      a tiny problem gains nothing from multiple grid steps).
    * B > 256: largest tile <= 1024 that still yields >= 2 grid steps (so the
      "parallel" axis can shard across v7x's two TensorCores), rounded to a
      multiple of 128 so the lane-dense [1, TM] output blocks stay aligned.
      Bigger tiles amortize the ~0.35us per-grid-step overhead.
    """
    if batch <= 256:
        return batch
    return min(1024, _round_up(pl.cdiv(batch, 2), 128))


def _epilogue_dtype():
    """bf16 fc1 epilogue on chips with a bf16 VPU (v6e/v7x); f32 on v5e/older."""
    try:
        kind = jax.devices()[0].device_kind.lower()
    except Exception:
        return jnp.bfloat16
    if any(old in kind for old in ("v2", "v3", "v4", "v5")):
        return jnp.float32
    return jnp.bfloat16


def _forward(x, params):
    B, Z = x.shape
    TM = _pick_tile(B)
    num_tiles = pl.cdiv(B, TM)
    B_pad = num_tiles * TM

    epi_dtype = _epilogue_dtype()
    w1 = params["w1"]                      # [Z, 512]  bf16 (pre-cast at init)
    b1 = params["b1"].astype(epi_dtype)    # [1, 512]
    w2 = params["w2"]                      # [512,128] bf16 (pre-cast at init)
    b2 = params["b2"]                      # [1, 128]  f32
    w3 = params["w3_row"]                  # [1, 128]  f32
    b3 = params["b3"]                      # [1, 1]    f32

    const = lambda i: (0, 0)  # weights/biases: same block every step -> VMEM-resident
    # TODO(synk): pipeline_mode=pl.Buffered(1) on the resident operands would reclaim
    # ~160 KiB of double-buffer VMEM; skipped since VMEM is nowhere near the limit here.

    out_row = pl.pallas_call(
        _disc_kernel,
        out_shape=jax.ShapeDtypeStruct((1, B_pad), jnp.float32),
        grid=(num_tiles,),
        in_specs=[
            # x tile is the only pipelined operand; a ragged last tile (B % TM != 0)
            # is boundary-padded by Pallas, so no jnp.pad copy of the whole input.
            pl.BlockSpec((TM, Z), lambda i: (i, 0)),
            pl.BlockSpec((Z, 512), const),     # w1 (bf16, resident)
            pl.BlockSpec((1, 512), const),     # b1
            pl.BlockSpec((512, 128), const),   # w2 (bf16, resident)
            pl.BlockSpec((1, 128), const),     # b2
            pl.BlockSpec((1, 128), const),     # w3 row
            pl.BlockSpec((1, 1), const),       # b3
        ],
        # Lane-dense output slab: step i writes columns [i*TM, (i+1)*TM) of one row.
        out_specs=pl.BlockSpec((1, TM), lambda i: (0, i)),
        compiler_params=pltpu.CompilerParams(
            dimension_semantics=("parallel",),
        ),
    )(x, w1, b1, w2, b2, w3, b3)

    return out_row[0, :B][:, None]  # back to the natural (B, 1) layout


# jit the whole wrapper: tile selection traces away, and the tiny bias cast plus
# the final slice/reshape fuse with the pallas_call instead of separate dispatches.
discriminator_forward = jax.jit(_forward)


def init_params(key, z_size):
    """PyTorch nn.Linear default init (U(-1/sqrt(fan_in), +)); matmul weights are
    stored pre-cast to bf16 so no per-call cast ops are needed."""
    ks = jax.random.split(key, 6)

    def linear(kw, kb, fan_in, fan_out):
        bound = 1.0 / jnp.sqrt(fan_in)
        # stored as [in, out] so the kernel computes x @ W
        w = jax.random.uniform(kw, (fan_in, fan_out), jnp.float32, -bound, bound)
        b = jax.random.uniform(kb, (1, fan_out), jnp.float32, -bound, bound)
        return w, b

    w1, b1 = linear(ks[0], ks[1], z_size, 512)
    w2, b2 = linear(ks[2], ks[3], 512, 128)
    w3, b3 = linear(ks[4], ks[5], 128, 1)
    return {
        "w1": w1.astype(jnp.bfloat16), "b1": b1,
        "w2": w2.astype(jnp.bfloat16), "b2": b2,
        # fc3 weight kept as a [1, 128] row (== PyTorch's [out, in]) for the VPU path.
        "w3_row": w3.T, "b3": b3,
    }


if __name__ == "__main__":
    key = jax.random.PRNGKey(0)
    z_size = 32
    batch = 16

    k_params, k_x = jax.random.split(key)
    params = init_params(k_params, z_size)
    x = jax.random.normal(k_x, (batch, z_size), jnp.float32)

    out = discriminator_forward(x, params)
    out = jax.block_until_ready(out)

    # Pure-JAX reference (same bf16-stored weights, f32 math).  Kernel matmuls are
    # bf16-in / f32-acc, so tolerance is relaxed vs pure f32.
    w1f = params["w1"].astype(jnp.float32)
    w2f = params["w2"].astype(jnp.float32)
    ref = jnp.maximum(x @ w1f + params["b1"], 0.0)
    ref = jnp.maximum(ref @ w2f + params["b2"], 0.0)
    ref = jax.nn.sigmoid(ref @ params["w3_row"].T + params["b3"])

    assert out.shape == (batch, 1), out.shape
    assert jnp.allclose(out, ref, atol=2e-2, rtol=2e-2), float(
        jnp.max(jnp.abs(out - ref)))

    print("KERNEL_OK")
</pallas_src>

<mosaic_0001>
module attributes {stable_mosaic.version = 11 : i64} {
  func.func @_disc_kernel(%arg0: i32, %arg1: memref<16x32xf32, #tpu.memory_space<vmem>>, %arg2: memref<32x512xbf16, #tpu.memory_space<vmem>>, %arg3: memref<1x512xbf16, #tpu.memory_space<vmem>>, %arg4: memref<512x128xbf16, #tpu.memory_space<vmem>>, %arg5: memref<1x128xf32, #tpu.memory_space<vmem>>, %arg6: memref<1x128xf32, #tpu.memory_space<vmem>>, %arg7: memref<1x1xf32, #tpu.memory_space<vmem>>, %arg8: memref<1x16xf32, #tpu.memory_space<vmem>>) attributes {dimension_semantics = [#tpu.dimension_semantics<parallel>], iteration_bounds = array<i64: 1>, scalar_prefetch = 0 : i64, scratch_operands = 0 : i64, tpu.core_type = #tpu.core_type<tc>, window_params = [{transform_indices = @transform_0, window_bounds = array<i64: 16, 32>}, {pipeline_mode = #tpu.pipeline_mode<synchronous>, transform_indices = @transform_1, window_bounds = array<i64: 32, 512>}, {pipeline_mode = #tpu.pipeline_mode<synchronous>, transform_indices = @transform_2, window_bounds = array<i64: 1, 512>}, {pipeline_mode = #tpu.pipeline_mode<synchronous>, transform_indices = @transform_3, window_bounds = array<i64: 512, 128>}, {pipeline_mode = #tpu.pipeline_mode<synchronous>, transform_indices = @transform_4, window_bounds = array<i64: 1, 128>}, {pipeline_mode = #tpu.pipeline_mode<synchronous>, transform_indices = @transform_5, window_bounds = array<i64: 1, 128>}, {pipeline_mode = #tpu.pipeline_mode<synchronous>, transform_indices = @transform_6, window_bounds = array<i64: 1, 1>}, {transform_indices = @transform_7, window_bounds = array<i64: 1, 16>}]} {
    %c0 = arith.constant 0 : index
    %c0_0 = arith.constant 0 : index
    %0 = vector.load %arg1[%c0, %c0_0] : memref<16x32xf32, #tpu.memory_space<vmem>>, vector<16x32xf32>
    %1 = arith.truncf %0 : vector<16x32xf32> to vector<16x32xbf16>
    %c0_1 = arith.constant 0 : index
    %c0_2 = arith.constant 0 : index
    %2 = vector.load %arg2[%c0_1, %c0_2] : memref<32x512xbf16, #tpu.memory_space<vmem>>, vector<32x512xbf16>
    %cst = arith.constant dense<0.000000e+00> : vector<16x512xf32>
    %3 = tpu.matmul %1, %2, %cst {dimension_numbers = #tpu.dot_dimension_numbers<[1], [0], [0], [1], [0, 0, 1, 1], [], []>} : vector<16x32xbf16>, vector<32x512xbf16>, vector<16x512xf32> -> vector<16x512xf32>
    %4 = arith.truncf %3 : vector<16x512xf32> to vector<16x512xbf16>
    %c0_3 = arith.constant 0 : index
    %c0_4 = arith.constant 0 : index
    %5 = vector.load %arg3[%c0_3, %c0_4] : memref<1x512xbf16, #tpu.memory_space<vmem>>, vector<1x512xbf16>
    %6 = vector.broadcast %5 : vector<1x512xbf16> to vector<16x512xbf16>
    %7 = arith.addf %4, %6 : vector<16x512xbf16>
    %cst_5 = arith.constant 0.000000e+00 : bf16
    %8 = vector.broadcast %cst_5 : bf16 to vector<16x512xbf16>
    %9 = arith.maximumf %7, %8 : vector<16x512xbf16>
    %c0_6 = arith.constant 0 : index
    %c0_7 = arith.constant 0 : index
    %10 = vector.load %arg4[%c0_6, %c0_7] : memref<512x128xbf16, #tpu.memory_space<vmem>>, vector<512x128xbf16>
    %cst_8 = arith.constant dense<0.000000e+00> : vector<16x128xf32>
    %11 = tpu.matmul %9, %10, %cst_8 {dimension_numbers = #tpu.dot_dimension_numbers<[1], [0], [0], [1], [0, 0, 1, 1], [], []>} : vector<16x512xbf16>, vector<512x128xbf16>, vector<16x128xf32> -> vector<16x128xf32>
    %c0_9 = arith.constant 0 : index
    %c0_10 = arith.constant 0 : index
    %12 = vector.load %arg5[%c0_9, %c0_10] : memref<1x128xf32, #tpu.memory_space<vmem>>, vector<1x128xf32>
    %13 = vector.broadcast %12 : vector<1x128xf32> to vector<16x128xf32>
    %14 = arith.addf %11, %13 : vector<16x128xf32>
    %cst_11 = arith.constant 0.000000e+00 : f32
    %15 = vector.broadcast %cst_11 : f32 to vector<16x128xf32>
    %16 = arith.maximumf %14, %15 : vector<16x128xf32>
    %c0_12 = arith.constant 0 : index
    %c0_13 = arith.constant 0 : index
    %17 = vector.load %arg6[%c0_12, %c0_13] : memref<1x128xf32, #tpu.memory_space<vmem>>, vector<1x128xf32>
    %18 = vector.broadcast %17 : vector<1x128xf32> to vector<16x128xf32>
    %19 = arith.mulf %16, %18 : vector<16x128xf32>
    %20 = tpu.transpose %19, [1, 0] : vector<16x128xf32> -> vector<128x16xf32>
    %cst_14 = arith.constant dense<0.000000e+00> : vector<16xf32>
    %21 = vector.multi_reduction <add>, %20, %cst_14 [0] : vector<128x16xf32> to vector<16xf32>
    %22 = vector.shape_cast %21 : vector<16xf32> to vector<1x16xf32>
    %c0_15 = arith.constant 0 : index
    %c0_16 = arith.constant 0 : index
    %23 = vector.load %arg7[%c0_15, %c0_16] : memref<1x1xf32, #tpu.memory_space<vmem>>, vector<1x1xf32>
    %24 = vector.broadcast %23 : vector<1x1xf32> to vector<1x16xf32>
    %25 = arith.addf %22, %24 : vector<1x16xf32>
    %26 = arith.negf %25 : vector<1x16xf32>
    %27 = math.exp %26 : vector<1x16xf32>
    %cst_17 = arith.constant 1.000000e+00 : f32
    %28 = vector.broadcast %cst_17 : f32 to vector<1x16xf32>
    %29 = arith.addf %28, %27 : vector<1x16xf32>
    %30 = arith.divf %28, %29 : vector<1x16xf32>
    %c0_18 = arith.constant 0 : index
    %c0_19 = arith.constant 0 : index
    %31 = vector.load %arg8[%c0_18, %c0_19] : memref<1x16xf32, #tpu.memory_space<vmem>>, vector<1x16xf32>
    tpu.vector_store %arg8[%c0_18, %c0_19], %30 {strides = array<i32>} : memref<1x16xf32, #tpu.memory_space<vmem>>, vector<1x16xf32>,
    return
  }
  func.func @transform_0(%arg0: i32) -> (i32, i32) {
    %c0_i32 = arith.constant 0 : i32
    %c0_i32_0 = arith.constant 0 : i32
    return %arg0, %c0_i32 : i32, i32
  }
  func.func @transform_1(%arg0: i32) -> (i32, i32) {
    %c0_i32 = arith.constant 0 : i32
    %c0_i32_0 = arith.constant 0 : i32
    %c0_i32_1 = arith.constant 0 : i32
    return %c0_i32, %c0_i32_0 : i32, i32
  }
  func.func @transform_2(%arg0: i32) -> (i32, i32) {
    %c0_i32 = arith.constant 0 : i32
    %c0_i32_0 = arith.constant 0 : i32
    %c0_i32_1 = arith.constant 0 : i32
    return %c0_i32, %c0_i32_0 : i32, i32
  }
  func.func @transform_3(%arg0: i32) -> (i32, i32) {
    %c0_i32 = arith.constant 0 : i32
    %c0_i32_0 = arith.constant 0 : i32
    %c0_i32_1 = arith.constant 0 : i32
    return %c0_i32, %c0_i32_0 : i32, i32
  }
  func.func @transform_4(%arg0: i32) -> (i32, i32) {
    %c0_i32 = arith.constant 0 : i32
    %c0_i32_0 = arith.constant 0 : i32
    %c0_i32_1 = arith.constant 0 : i32
    return %c0_i32, %c0_i32_0 : i32, i32
  }
  func.func @transform_5(%arg0: i32) -> (i32, i32) {
    %c0_i32 = arith.constant 0 : i32
    %c0_i32_0 = arith.constant 0 : i32
    %c0_i32_1 = arith.constant 0 : i32
    return %c0_i32, %c0_i32_0 : i32, i32
  }
  func.func @transform_6(%arg0: i32) -> (i32, i32) {
    %c0_i32 = arith.constant 0 : i32
    %c0_i32_0 = arith.constant 0 : i32
    %c0_i32_1 = arith.constant 0 : i32
    return %c0_i32, %c0_i32_0 : i32, i32
  }
  func.func @transform_7(%arg0: i32) -> (i32, i32) {
    %c0_i32 = arith.constant 0 : i32
    %c0_i32_0 = arith.constant 0 : i32
    return %c0_i32, %arg0 : i32, i32
  }
}

</mosaic_0001>

<bundles_post_ra>
// kernel: _forward.1
= control target key start
LH: loop header
LB: loop body
LE: loop exit
PB: predicated region body
PF: predicated region fallthrough
CT: control target
= control target key end

     0   :  { %s1085_s0 = inlined_call_operand.hbm [shape: f32[16,32], index: 0, kind: input, shape index: {}]   ;;  %s1086_s1 = inlined_call_operand.hbm [shape: bf16[32,512], index: 1, kind: input, shape index: {}]   ;;  %s1087_s2 = inlined_call_operand.vmem [shape: bf16[1,512], index: 2, kind: input, shape index: {}]   ;;  %s1088_s3 = inlined_call_operand.hbm [shape: bf16[512,128], index: 3, kind: input, shape index: {}]   ;;  %s1089_s4 = inlined_call_operand.vmem [shape: f32[1,128], index: 4, kind: input, shape index: {}]   ;;  %s1090_s5 = inlined_call_operand.vmem [shape: f32[1,128], index: 5, kind: input, shape index: {}]   ;;  %s1091_s6 = inlined_call_operand.<no memory space> [shape: f32[1,1], index: 6, kind: input, shape index: {}]   ;;  %s1092_s7 = inlined_call_operand.hbm [shape: f32[1,16], index: 7, kind: output, shape index: {}]  }
   0x1   :  { %v12_v0 = vstv %s1091_s6 }
   0x2   :  { %13 = vst [vmem:[#allocation2] sm:$0x1] %v12_v0 }
   0x3   :  { %14 = vsyncpa [#allocation4], 0 }
   0x4   :  { %15 = vsyncpa [#allocation7], 0 }
   0x5   :  { %16 = vsyncpa [#allocation5], 0  ;;  %s978_s26 = smov [#allocation6]  }
   0x6   :  { %s34_s27 = sshll.u32 %s978_s26, 4  ;;  %s35_s27 = int_to_ptr.vmem [resolvable:$true] %s34_s27 }
   0x7   :  { %s900_s28 = scalar_lea.vmem %s35_s27, 1024  ;;  %p905_p1 = scmp.lt.s32.totalorder %s35_s27, %s35_s27 }
   0x8   :  { %p901_p0 = scmp.ne.s32.totalorder %s35_s27, %s900_s28  ;;  %p906_p2 = scmp.lt.s32.totalorder %s900_s28, %s900_s28 }
   0xa   :  { %p907_p3 = por %p906_p2, %p905_p1 }
   0xc   :  { %p908_p4 = pnand %p907_p3, %p901_p0 }
   0xe   :  { %911 = shalt.err (!%p908_p4)
}
   0xf   :  { %s979_s29 = smov 256   ;;  %s980_s30 = smov 16  }
  0x10   :  { %40 = dma.hbm_to_vmem [thread:$0]  %s1086_s1, 1024, %s35_s27, [#allocation7], %s979_s29, %s979_s29, %s980_s30  }
  0x11   :  { %s981_s6 = smov [#allocation3]  }
  0x12   :  { %s22_s10 = sshll.u32 %s981_s6, 4  ;;  %s23_s10 = int_to_ptr.vmem [resolvable:$true] %s22_s10 }
  0x13   :  { %s920_s11 = scalar_lea.vmem %s23_s10, 256  ;;  %p925_p6 = scmp.lt.s32.totalorder %s23_s10, %s23_s10 }
  0x14   :  { %p921_p5 = scmp.ne.s32.totalorder %s23_s10, %s920_s11  ;;  %p926_p7 = scmp.lt.s32.totalorder %s920_s11, %s920_s11 }
  0x16   :  { %p927_p8 = por %p926_p7, %p925_p6 }
  0x18   :  { %p928_p9 = pnand %p927_p8, %p921_p5 }
  0x1a   :  { %931 = shalt.err (!%p928_p9)
}
  0x1b   :  { %s982_s12 = smov 128   ;;  %s983_s13 = smov 8  }
  0x1c   :  { %28 = dma.hbm_to_vmem [thread:$0]  %s1085_s0, 256, %s23_s10, [#allocation4], %s982_s12, %s982_s12, %s983_s13  }
  0x1d   :  { %s984_s16 = smov [#allocation8]  }
  0x1e   :  { %s48_s17 = sshll.u32 %s984_s16, 4  ;;  %s49_s17 = int_to_ptr.vmem [resolvable:$true] %s48_s17 }
  0x1f   :  { %s940_s1 = scalar_lea.vmem %s49_s17, 4096  ;;  %p945_p11 = scmp.lt.s32.totalorder %s49_s17, %s49_s17 }
  0x20   :  { %p941_p10 = scmp.ne.s32.totalorder %s49_s17, %s940_s1  ;;  %p946_p12 = scmp.lt.s32.totalorder %s940_s1, %s940_s1 }
  0x22   :  { %p947_p13 = por %p946_p12, %p945_p11 }
  0x24   :  { %p948_p0 = pnand %p947_p13, %p941_p10 }
  0x26   :  { %951 = shalt.err (!%p948_p0)
}
  0x27   :  { %s985_s18 = smov 64   ;;  %s986_s19 = smov 4  }
  0x28   :  { %54 = dma.hbm_to_vmem [thread:$0]  %s1088_s3, 4096, %s49_s17, [#allocation7], %s985_s18, %s985_s18, %s986_s19  }
  0x29   :  { %972 = dma.done.wait [#allocation4], 256  }
  0x2a   :  { %973 = vsyncadd [#allocation4], 4294967040 }
  0x2b   :  { %974 = dma.done.wait [#allocation7], 5120  }
  0x2c   :  { %975 = vsyncadd [#allocation7], 4294962176  ;;  %v987_v1 = vmov 0   ;;  %v844_v2 = vld [vmem:[#allocation6 + $0x24] ss:$16 sps:$4 sm:$0xff]   ;;  %v72_v11 = vld [vmem:[#allocation3 + $0x8] sm:$0xff]  ;;  %v229_v47 = vlaneseq }
  0x2d   :  { %158 = vmatprep.mubr.bf16.mxu0 %v987_v1  ;;  %201 = vmatprep.mubr.bf16.mxu1 %v987_v1  ;;  %v846_v3 = vld [vmem:[#allocation6 + $0x2c] ss:$16 sps:$4 sm:$0xff]   ;;  %v848_v4 = vld [vmem:[#allocation6 + $0x20] ss:$16 sps:$4 sm:$0xff]   ;;  %v849_v5 = vld [vmem:[#allocation6 + $0x28] ss:$16 sps:$4 sm:$0xff]  }
  0x2e   :  { %842 = vset.pattern.permute.xlu1 %v987_v1  ;;  %138 = vmatprep.subr.bf16.mxu0 %v844_v2  ;;  %v850_v6 = vld [vmem:[#allocation6 + $0x4] ss:$16 sps:$4 sm:$0xff]   ;;  %v852_v7 = vld [vmem:[#allocation6 + $0xc] ss:$16 sps:$4 sm:$0xff]   ;;  %v854_v8 = vld [vmem:[#allocation6] ss:$16 sps:$4 sm:$0xff]  }
  0x2f   :  { %181 = vmatprep.subr.bf16.mxu1 %v846_v3  ;;  %139 = vmatpush1.bf16.msra.mxu0 %v848_v4  ;;  %v855_v9 = vld [vmem:[#allocation6 + $0x8] ss:$16 sps:$4 sm:$0xff]   ;;  %v71_v10 = vld [vmem:[#allocation3] sm:$0xff]  ;;  %vm122_vm0 = vcmask 261120   ;;  %v868_v25 = vld [vmem:[#allocation8 + $0x60] sm:$0xff]   ;;  %v230_v49 = vshrl.u32 %v229_v47, 7 }
  0x30   :  { %182 = vmatpush1.bf16.msra.mxu1 %v849_v5  ;;  %140 = vmatprep.subr.bf16.mxu0 %v850_v6  ;;  %v856_v12 = vld [vmem:[#allocation8 + $0x78] sm:$0xff]   ;;  %v73_v13 = vpack.c.bf16 %v72_v11, %v71_v10  ;;  %v860_v17 = vld [vmem:[#allocation8 + $0x70] sm:$0xff]   ;;  %v864_v21 = vld [vmem:[#allocation8 + $0x68] sm:$0xff]   ;;  %v988_v45 = vmov 1966171168   ;;  %vm666_vm1 = vcmask 130048  }
  0x31   :  { %183 = vmatprep.subr.bf16.mxu1 %v852_v7  ;;  %v857_v14 = vld [vmem:[#allocation8 + $0xf8] sm:$0xff]   ;;  %v861_v18 = vld [vmem:[#allocation8 + $0xf0] sm:$0xff]   ;;  %v865_v22 = vld [vmem:[#allocation8 + $0xe8] sm:$0xff]   ;;  %v227_v46 = vunpack.c.l.s4 %v988_v45  ;;  %v1048_v60 = vsub.s32 0, %v230_v49  ;;  %vm721_vm2 = vcmask 122880  }
  0x32   :  { %v858_v15 = vld [vmem:[#allocation8 + $0x38] sm:$0xff]   ;;  %v862_v19 = vld [vmem:[#allocation8 + $0x30] sm:$0xff]   ;;  %v866_v23 = vld [vmem:[#allocation8 + $0x28] sm:$0xff]  }
  0x33   :  { %141 = vmatpush1.bf16.msra.mxu0 %v854_v8  ;;  %v859_v16 = vld [vmem:[#allocation8 + $0xb8] sm:$0xff]   ;;  %v863_v20 = vld [vmem:[#allocation8 + $0xb0] sm:$0xff]   ;;  %v867_v24 = vld [vmem:[#allocation8 + $0xa8] sm:$0xff]   ;;  %v228_v48 = vunpack.c.0.s8 %v227_v46 }
  0x34   :  { %184 = vmatpush1.bf16.msra.mxu1 %v855_v9  ;;  %785 = vmatprep.subr.bf16.mxu0 %v856_v12  ;;  %v869_v26 = vld [vmem:[#allocation8 + $0xe0] sm:$0xff]   ;;  %v872_v29 = vld [vmem:[#allocation8 + $0x58] sm:$0xff]   ;;  %v876_v33 = vld [vmem:[#allocation8 + $0x50] sm:$0xff]  }
  0x35   :  { %807 = vmatprep.subr.bf16.mxu1 %v857_v14  ;;  %v870_v27 = vld [vmem:[#allocation8 + $0x20] sm:$0xff]   ;;  %v873_v30 = vld [vmem:[#allocation8 + $0xd8] sm:$0xff]   ;;  %v877_v34 = vld [vmem:[#allocation8 + $0xd0] sm:$0xff]   ;;  %v231_v51 = vsub.s32 %v228_v48, %v230_v49 }
  0x36   :  { %747 = vmatmul.mubr.msk.bf16.vlgmr.msra.gmra.mxu0 %vm122_vm0, %v73_v13  ;;  %v871_v28 = vld [vmem:[#allocation8 + $0xa0] sm:$0xff]   ;;  %v874_v31 = vld [vmem:[#allocation8 + $0x18] sm:$0xff]   ;;  %v878_v35 = vld [vmem:[#allocation8 + $0x10] sm:$0xff]  }
  0x37   :  { %748 = vmatmul.mubr.msk.bf16.vlgmr.msra.gmra.mxu1 %vm122_vm0, %v73_v13  ;;  %786 = vmatpush3.bf16.msra.mxu0 %v858_v15  ;;  %v875_v32 = vld [vmem:[#allocation8 + $0x98] sm:$0xff]   ;;  %v879_v36 = vld [vmem:[#allocation8 + $0x90] sm:$0xff]   ;;  %v880_v37 = vld [vmem:[#allocation8 + $0x48] sm:$0xff]  }
  0x38   :  { %808 = vmatpush3.bf16.msra.mxu1 %v859_v16  ;;  %787 = vmatprep.subr.bf16.mxu0 %v860_v17  ;;  %v881_v38 = vld [vmem:[#allocation8 + $0xc8] sm:$0xff]   ;;  %v884_v41 = vld [vmem:[#allocation8 + $0x40] sm:$0xff]  }
  0x39   :  { %809 = vmatprep.subr.bf16.mxu1 %v861_v18  ;;  %v882_v39 = vld [vmem:[#allocation8 + $0x8] sm:$0xff]   ;;  %v885_v42 = vld [vmem:[#allocation8 + $0xc0] sm:$0xff]  }
  0x3a   :  { %v883_v40 = vld [vmem:[#allocation8 + $0x88] sm:$0xff]   ;;  %v886_v43 = vld [vmem:[#allocation8] sm:$0xff]  }
  0x3b   :  { %788 = vmatpush3.bf16.msra.mxu0 %v862_v19  ;;  %v887_v44 = vld [vmem:[#allocation8 + $0x80] sm:$0xff]   ;;  %v749_v50 = vld.sshfl [vmem:[%s1087_s2] sm:$0x33 pattern:$0x75316420] }
  0x3c   :  { %810 = vmatpush3.bf16.msra.mxu1 %v863_v20  ;;  %789 = vmatprep.subr.bf16.mxu0 %v864_v21  ;;  %v225_v52 = vcombine.high %v749_v50, %v749_v50  ;;  %v232_v53 = vrot.slane %v749_v50, %v231_v51 }
  0x3d   :  { %811 = vmatprep.subr.bf16.mxu1 %v865_v22 }
  0x3e   :  { %v239_v54 = vrot.slane %v225_v52, %v231_v51  ;;  %v240_v55 = vcombine.high %v232_v53, %v232_v53  ;;  %v243_v59 = vpack.i.b16 %v232_v53, %v232_v53 }
  0x3f   :  { %790 = vmatpush3.bf16.msra.mxu0 %v866_v23  ;;  %v704_v23 = vld [vmem:[#allocation2] sm:$0x1] }
  0x40   :  { %812 = vmatpush3.bf16.msra.mxu1 %v867_v24  ;;  %791 = vmatprep.subr.bf16.mxu0 %v868_v25  ;;  %v241_v56 = vcombine.high %v239_v54, %v239_v54  ;;  %v257_v61 = vpack.i.b16 %v240_v55, %v240_v55  ;;  %v250_v62 = vpack.i.b16 %v239_v54, %v239_v54 }
  0x41   :  { %813 = vmatprep.subr.bf16.mxu1 %v869_v26  ;;  %v248_v4 = vrot.slane %v243_v59, %v1048_v60  ;;  %707 = vperm.xlu1 %842, %v704_v23   ;;  %v750_v26 = vld [vmem:[%s1089_s4] ss:$0 sm:$0xff]  ;;  %s989_s4 = smov [#allocation9]  }
  0x42   :  { %v264_v63 = vpack.i.b16 %v241_v56, %v241_v56  ;;  %v262_v6 = vrot.slane %v257_v61, %v1048_v60  ;;  %v255_v9 = vrot.slane %v250_v62, %v1048_v60 }
  0x43   :  { %792 = vmatpush3.bf16.msra.mxu0 %v870_v27 }
  0x44   :  { %814 = vmatpush3.bf16.msra.mxu1 %v871_v28  ;;  %793 = vmatprep.subr.bf16.mxu0 %v872_v29  ;;  %v269_v10 = vrot.slane %v264_v63, %v1048_v60 }
  0x45   :  { %815 = vmatprep.subr.bf16.mxu1 %v873_v30 }
  0x47   :  { %794 = vmatpush3.bf16.msra.mxu0 %v874_v31 }
  0x48   :  { %816 = vmatpush3.bf16.msra.mxu1 %v875_v32  ;;  %795 = vmatprep.subr.bf16.mxu0 %v876_v33 }
  0x49   :  { %817 = vmatprep.subr.bf16.mxu1 %v877_v34 }
  0x4b   :  { %796 = vmatpush3.bf16.msra.mxu0 %v878_v35 }
  0x4c   :  { %818 = vmatpush3.bf16.msra.mxu1 %v879_v36  ;;  %797 = vmatprep.subr.bf16.mxu0 %v880_v37 }
  0x4d   :  { %819 = vmatprep.subr.bf16.mxu1 %v881_v38  ;;  %v783_v38 = vld [vmem:[%s1090_s5] ss:$0 sm:$0xff]  ;;  %s729_s5 = sshll.u32 %s989_s4, 4  ;;  %s730_s5 = int_to_ptr.vmem [resolvable:$true] %s729_s5 }
  0x4e   :  { %s952_s25 = scalar_lea.vmem %s730_s5, 16  ;;  %s956_s26 = scalar_lea.vmem %s730_s5, 32 }
  0x4f   :  { %798 = vmatpush3.bf16.msra.mxu0 %v882_v39  ;;  %p953_p1 = scmp.ne.s32.totalorder %s730_s5, %s952_s25  ;;  %p957_p2 = scmp.lt.s32.totalorder %s730_s5, %s730_s5 }
  0x50   :  { %820 = vmatpush3.bf16.msra.mxu1 %v883_v40  ;;  %799 = vmatprep.subr.bf16.mxu0 %v884_v41  ;;  %p958_p3 = scmp.lt.s32.totalorder %s956_s26, %s952_s25 }
  0x51   :  { %821 = vmatprep.subr.bf16.mxu1 %v885_v42 }
  0x52   :  { %p959_p4 = por %p958_p3, %p957_p2 }
  0x53   :  { %800 = vmatpush3.bf16.msra.mxu0 %v886_v43 }
  0x54   :  { %822 = vmatpush3.bf16.msra.mxu1 %v887_v44  ;;  %p960_p5 = pnand %p959_p4, %p953_p1 }
  0xf6   :  { %v160_v57 = vpop.f32.mrf.mxu0 }
  0xf7   :  { %v203_v58 = vpop.f32.mrf.mxu1 }
  0xf8   :  { %v162_v0 = vpop.f32.mrf.mxu0 }
  0xf9   :  { %v205_v2 = vpop.f32.mrf.mxu1 }
  0xfa   :  { %v164_v3 = vpop.f32.mrf.mxu0 }
  0xfb   :  { %v207_v5 = vpop.f32.mrf.mxu1  ;;  %v212_v7 = vpack.c.bf16 %v164_v3, %v160_v57 }
  0xfc   :  { %v214_v8 = vpack.c.bf16 %v207_v5, %v203_v58  ;;  %v166_v11 = vpop.f32.mrf.mxu0 }
  0xfd   :  { %v209_v12 = vpop.f32.mrf.mxu1  ;;  %v213_v13 = vpack.c.bf16 %v166_v11, %v162_v0  ;;  %v270_v15 = vadd.bf16 %v248_v4, %v212_v7 }
  0xfe   :  { %v215_v14 = vpack.c.bf16 %v209_v12, %v205_v2  ;;  %v272_v16 = vadd.bf16 %v262_v6, %v214_v8 }
  0xff   :  { %v271_v17 = vadd.bf16 %v255_v9, %v213_v13  ;;  %v274_v21 = vmax.bf16 %v987_v1, %v270_v15 }
 0x100   :  { %v273_v18 = vadd.bf16 %v269_v10, %v215_v14  ;;  %v276_v22 = vmax.bf16 %v987_v1, %v272_v16 }
 0x101   :  { %v275_v19 = vmax.bf16 %v987_v1, %v271_v17 }
 0x102   :  { %v277_v20 = vmax.bf16 %v987_v1, %v273_v18 }
 0x103   :  { %573 = vmatprep.mubr.bf16.mxu0 %v275_v19 }
 0x104   :  { %614 = vmatprep.mubr.bf16.mxu1 %v277_v20  ;;  %574 = vmatmul.mubr.bf16.vlgmr.msra.gmra.mxu0 %v274_v21 }
 0x105   :  { %615 = vmatmul.mubr.bf16.vlgmr.msra.gmra.mxu1 %v276_v22 }
 0x1c4   :  { %v801_v24 = vpop.f32.mrf.mxu0 }
 0x1c5   :  { %v823_v25 = vpop.f32.mrf.mxu1 }
 0x1c6   :  { %v802_v27 = vpop.f32.mrf.mxu0 }
 0x1c7   :  { %v824_v28 = vpop.f32.mrf.mxu1  ;;  %v803_v29 = vadd.f32 %v802_v27, %v801_v24 }
 0x1c8   :  { %v804_v30 = vpop.f32.mrf.mxu0  ;;  %v825_v33 = vadd.f32 %v824_v28, %v823_v25 }
 0x1c9   :  { %v826_v31 = vpop.f32.mrf.mxu1  ;;  %v576_v32 = vadd.f32 %v803_v29, %v750_v26 }
 0x1ca   :  { %v805_v34 = vpop.f32.mrf.mxu0 }
 0x1cb   :  { %v827_v35 = vpop.f32.mrf.mxu1  ;;  %v806_v36 = vadd.f32 %v805_v34, %v804_v30  ;;  %v617_v37 = vadd.f32 %v825_v33, %v576_v32  ;;  %v708_v33 = vpop.permute.xlu1 %707 }
 0x1cc   :  { %v828_v40 = vadd.f32 %v827_v35, %v826_v31 }
 0x1cd   :  { %v579_v39 = vadd.f32 %v806_v36, %v750_v26  ;;  %v623_v41 = vmax.f32 %v617_v37, 0.0  ;;  %v713_v36 = vrot.slane %v708_v33, %v1048_v60 }
 0x1cf   :  { %v620_v42 = vadd.f32 %v828_v40, %v579_v39  ;;  %v632_v43 = vmul.f32 %v783_v38, %v623_v41 }
 0x1d1   :  { %v624_v44 = vmax.f32 %v620_v42, 0.0  ;;  %634 = vxpose.xlu0.b32.start [1/2] (short) %v632_v43, 128 }
 0x1d3   :  { %v633_v45 = vmul.f32 %v783_v38, %v624_v44 }
 0x1d5   :  { %635 = vxpose.xlu0.b32.end [2/2] (short) %v633_v45, 128 }
 0x1fe   :  { %843 = vset.pattern.permute.xlu0 %v987_v1 }
 0x24d   :  { %v650_v46 = vpop.trf.xlu0 }
 0x24e   :  { %v667_v56 = vsel %vm666_vm1, %v650_v46, 0.0 }
 0x251   :  { %v651_v47 = vpop.trf.xlu0 }
 0x252   :  { %v668_v54 = vsel %vm666_vm1, %v651_v47, 0.0 }
 0x253   :  { %v669_v58 = vadd.f32 %v668_v54, %v667_v56 }
 0x255   :  { %v652_v48 = vpop.trf.xlu0 }
 0x256   :  { %v670_v57 = vsel %vm666_vm1, %v652_v48, 0.0 }
 0x257   :  { %v671_v1 = vadd.f32 %v670_v57, %v669_v58 }
 0x259   :  { %v653_v49 = vpop.trf.xlu0 }
 0x25a   :  { %v672_v59 = vsel %vm666_vm1, %v653_v49, 0.0 }
 0x25b   :  { %v673_v63 = vadd.f32 %v672_v59, %v671_v1 }
 0x25d   :  { %v654_v50 = vpop.trf.xlu0 }
 0x25e   :  { %v674_v62 = vsel %vm666_vm1, %v654_v50, 0.0 }
 0x25f   :  { %v675_v2 = vadd.f32 %v674_v62, %v673_v63 }
 0x261   :  { %v655_v51 = vpop.trf.xlu0 }
 0x262   :  { %v676_v0 = vsel %vm666_vm1, %v655_v51, 0.0 }
 0x263   :  { %v677_v5 = vadd.f32 %v676_v0, %v675_v2 }
 0x265   :  { %v656_v52 = vpop.trf.xlu0 }
 0x266   :  { %v678_v4 = vsel %vm666_vm1, %v656_v52, 0.0 }
 0x267   :  { %v679_v7 = vadd.f32 %v678_v4, %v677_v5 }
 0x269   :  { %v657_v53 = vpop.trf.xlu0 }
 0x26a   :  { %v680_v6 = vsel %vm666_vm1, %v657_v53, 0.0 }
 0x26b   :  { %v681_v10 = vadd.f32 %v680_v6, %v679_v7 }
 0x26d   :  { %v658_v55 = vpop.trf.xlu0 }
 0x26e   :  { %v682_v9 = vsel %vm666_vm1, %v658_v55, 0.0 }
 0x26f   :  { %v683_v12 = vadd.f32 %v682_v9, %v681_v10 }
 0x271   :  { %v659_v61 = vpop.trf.xlu0 }
 0x272   :  { %v684_v11 = vsel %vm666_vm1, %v659_v61, 0.0 }
 0x273   :  { %v685_v15 = vadd.f32 %v684_v11, %v683_v12 }
 0x275   :  { %v660_v3 = vpop.trf.xlu0 }
 0x276   :  { %v686_v14 = vsel %vm666_vm1, %v660_v3, 0.0 }
 0x277   :  { %v687_v17 = vadd.f32 %v686_v14, %v685_v15 }
 0x279   :  { %v661_v8 = vpop.trf.xlu0 }
 0x27a   :  { %v688_v16 = vsel %vm666_vm1, %v661_v8, 0.0 }
 0x27b   :  { %v689_v20 = vadd.f32 %v688_v16, %v687_v17 }
 0x27d   :  { %v662_v13 = vpop.trf.xlu0 }
 0x27e   :  { %v690_v19 = vsel %vm666_vm1, %v662_v13, 0.0 }
 0x27f   :  { %v691_v22 = vadd.f32 %v690_v19, %v689_v20 }
 0x281   :  { %v663_v18 = vpop.trf.xlu0 }
 0x282   :  { %v692_v21 = vsel %vm666_vm1, %v663_v18, 0.0 }
 0x283   :  { %v693_v25 = vadd.f32 %v692_v21, %v691_v22 }
 0x285   :  { %v664_v23 = vpop.trf.xlu0 }
 0x286   :  { %v694_v24 = vsel %vm666_vm1, %v664_v23, 0.0 }
 0x287   :  { %v695_v26 = vadd.f32 %v694_v24, %v693_v25 }
 0x289   :  { %v665_v27 = vpop.trf.xlu0 }
 0x28a   :  { %v696_v28 = vsel %vm666_vm1, %v665_v27, 0.0 }
 0x28b   :  { %v697_v29 = vadd.f32 %v696_v28, %v695_v26 }
 0x28d   :  { %v698_v30 = vrot.slane %v697_v29, 4 }
 0x28f   :  { %v699_v31 = vadd.f32 %v698_v30, %v697_v29 }
 0x291   :  { %v700_v32 = vrot.slane %v699_v31, 2 }
 0x293   :  { %v701_v34 = vadd.f32 %v700_v32, %v699_v31 }
 0x295   :  { %v702_v35 = vrot.slane %v701_v34, 1 }
 0x297   :  { %v703_v37 = vadd.f32 %v702_v35, %v701_v34 }
 0x299   :  { %v714_v38 = vadd.f32 %v713_v36, %v703_v37 }
 0x29b   :  { %v784_v39 = vmul.f32 -1.442695, %v714_v38 }
 0x29d   :  { %888 = vpow2.f32 %v784_v39 }
 0x2aa   :  { %v889_v40 = vpop.eup %888 }
 0x2ab   :  { %v718_v41 = vadd.f32 1.0, %v889_v40 }
 0x2ad   :  { %890 = vrcp.f32 %v718_v41 }
 0x2ba   :  { %v891_v42 = vpop.eup %890 }
 0x2bb   :  { %722 = vst.msk [vmem:[#allocation9] sm:$0x1] %vm721_vm2, %v891_v42 }
 0x2bc   :  { %963 = shalt.err (!%p960_p5)
}
 0x2bd   :  { %732 = dma.vmem_to_hbm [thread:$0]  %s730_s5, 16, %s1092_s7, [#allocation5]  }
 0x2be   :  { %976 = dma.done.wait [#allocation5], 16  }
 0x2bf   :  { %977 = vsyncadd [#allocation5], 4294967280 }
 0x2c0   :  { %736 = vsyncpa [#allocation4], 1 }
 0x2c1   :  { %737 = vsyncpa [#allocation7], 1 }
 0x2c2   :  { %738 = vsyncpa [#allocation5], 1 }

</bundles_post_ra>
